<compile_context>
chip_gen: v7x
topology: tpu7x:2x2x1
jax: 0.10.0
libtpu: 0.0.40
codegen_flags: <defaults>
</compile_context>

<pallas_src>
import functools

import numpy as np
import jax
import jax.numpy as jnp
from jax import lax
from jax.experimental import pallas as pl
from jax.experimental.pallas import tpu as pltpu

# Small synthetic STFT config (production module defaults to filter_length=1024,
# n_overlap=4, cutoff=513; this keeps the script's shapes tiny while exercising
# the exact same layout / padding / tiling logic).
FILTER_LENGTH = 16
N_OVERLAP = 4
HOP = FILTER_LENGTH // N_OVERLAP
WIN_LENGTH = 16
CUTOFF = FILTER_LENGTH // 2 + 1  # 9

_LANE = 128
_SUBLANE = 8
_EPS = 1e-30  # rsqrt guard (f32-normal); inert relative to audio magnitudes


def _round_up(x, m):
    return (x + m - 1) // m * m


def _make_stft_bases():
    """Replicates the Tacotron2/WaveGlow STFT forward / inverse bases (hann window)."""
    N = FILTER_LENGTH
    fourier = np.fft.fft(np.eye(N))
    fb = np.vstack([np.real(fourier[:CUTOFF]), np.imag(fourier[:CUTOFF])])  # (2C, N)
    scale = N / HOP
    forward_basis = fb.copy()
    inverse_basis = np.linalg.pinv(scale * fb).T                             # (2C, N)
    # periodic hann window; pad_center is a no-op (win_length == filter_length).
    n = np.arange(WIN_LENGTH)
    win = 0.5 - 0.5 * np.cos(2.0 * np.pi * n / WIN_LENGTH)
    forward_basis = (forward_basis * win).astype(np.float32)
    inverse_basis = (inverse_basis * win).astype(np.float32)
    return forward_basis, inverse_basis, win.astype(np.float32)


def _window_sumsquare(win, n_frames):
    """librosa window_sumsquare with norm=None (as used by STFT.inverse)."""
    n = FILTER_LENGTH + HOP * (n_frames - 1)
    x = np.zeros(n, dtype=np.float32)
    win_sq = (win.astype(np.float64) ** 2).astype(np.float32)
    for i in range(n_frames):
        s = i * HOP
        x[s:min(n, s + FILTER_LENGTH)] += win_sq[:max(0, min(FILTER_LENGTH, n - s))]
    return x


def _build_padded_bases():
    """Lane-padded bf16 bases: fwd (N_pad, 2*C_pad), inv_real/inv_imag (C_pad, N_pad)."""
    N, C = FILTER_LENGTH, CUTOFF
    n_pad = _round_up(N, _LANE)
    c_pad = _round_up(C, _LANE)
    fwd_basis, inv_basis, win = _make_stft_bases()

    fwd_cat = np.zeros((n_pad, 2 * c_pad), np.float32)
    fwd_cat[:N, :C] = fwd_basis[:C].T                  # real columns
    fwd_cat[:N, c_pad:c_pad + C] = fwd_basis[C:].T     # imag columns

    inv_real = np.zeros((c_pad, n_pad), np.float32)
    inv_imag = np.zeros((c_pad, n_pad), np.float32)
    inv_real[:C, :N] = inv_basis[:C]
    inv_imag[:C, :N] = inv_basis[C:]
    return (jnp.asarray(fwd_cat, jnp.bfloat16),
            jnp.asarray(inv_real, jnp.bfloat16),
            jnp.asarray(inv_imag, jnp.bfloat16),
            win, n_pad, c_pad)


def _denoise_kernel(frames_ref, fwd_ref, invr_ref, invi_ref, bias_ref, out_ref, *, c_pad):
    """One (TILE_F, N_pad) bf16 frames tile -> per-frame inverse-STFT contributions (f32)."""
    # Forward STFT: single fused lane-dense bf16 matmul, f32 accumulation.
    spec = jnp.dot(frames_ref[...], fwd_ref[...], preferred_element_type=jnp.float32)
    real = spec[:, :c_pad]
    imag = spec[:, c_pad:]

    sq = real * real + imag * imag
    inv_mag = lax.rsqrt(sq + _EPS)            # EUP slot; effectively free
    mag = sq * inv_mag                        # == sqrt(sq) up to eps

    # bias_ref already holds bias_spec * strength (constant-folded in the wrapper).
    # torch: clamp(mag - bias*strength, 0.0) recombined with the original phase:
    #   [mag_d*cos | mag_d*sin] == [real | imag] * (mag_d * inv_mag)
    scale = jnp.maximum(mag - bias_ref[...], 0.0) * inv_mag

    # Inverse STFT: two bf16 matmuls accumulated in f32 (no spec scratch round-trip).
    real_d = (real * scale).astype(jnp.bfloat16)
    imag_d = (imag * scale).astype(jnp.bfloat16)
    acc = jnp.dot(real_d, invr_ref[...], preferred_element_type=jnp.float32)
    acc = acc + jnp.dot(imag_d, invi_ref[...], preferred_element_type=jnp.float32)
    out_ref[...] = acc.astype(out_ref.dtype)


def _vmem_capacity_bytes():
    try:
        return int(pltpu.get_tpu_info().vmem_capacity_bytes)
    except Exception:
        return 64 << 20  # conservative (v7x per-TensorCore)


def _pick_tile_f(F, n_pad, c_pad, vmem_cap):
    """Frame-tile rows, budgeted per-buffer against this generation's VMEM."""
    # Per-row bytes: frames bf16 x2 bufs + out f32 x2 bufs + ~2 live f32 spec-width temps.
    per_row = 2 * (2 * n_pad) + 2 * (4 * n_pad) + 2 * 4 * (2 * c_pad)
    # Resident single-buffered bf16 bases + bias row.
    resident = 2 * (2 * c_pad) * n_pad * 2 + _SUBLANE * c_pad * 4
    budget = int(vmem_cap * 0.8) - resident - (8 << 20)        # compiler-scratch headroom
    hard_cap = 2048 if vmem_cap >= (100 << 20) else 1024       # v5e/v6e vs v7x
    tile_cap = max(_SUBLANE, min(hard_cap, (budget // per_row) // _SUBLANE * _SUBLANE))

    if F <= tile_cap:
        return _round_up(max(F, _SUBLANE), _SUBLANE)           # single well-shaped step
    steps = pl.cdiv(F, tile_cap)
    if steps % 2:
        steps += 1                                             # even split for dual-TC v7x
    if steps == 2 and F >= 4 * 512:
        steps = 4                                              # >=2 pipelined steps per core
    return _round_up(pl.cdiv(F, steps), _SUBLANE)


def _overlap_add_normalize(contribs, win, idx):
    """conv_transpose1d overlap-add + window-sum normalization + trimming."""
    B, n_frames, N = contribs.shape
    H = HOP
    L_out = N + H * (n_frames - 1)
    y = jnp.zeros((B, L_out), jnp.float32).at[:, jnp.asarray(idx)].add(contribs)
    window_sum = jnp.asarray(_window_sumsquare(win, n_frames))
    tiny = np.finfo(np.float32).tiny
    y = jnp.where(window_sum[None, :] > tiny, y / window_sum[None, :], y)
    y = y * (float(N) / H)
    y = y[:, N // 2:]
    y = y[:, :-(N // 2)]
    return y[:, None, :]                       # (B, 1, T) like torch


def denoiser_forward(audio, bias_spec, strength=10.0):
    """audio: (B, T) float32; bias_spec: (1, CUTOFF, 1). Returns (B, 1, T)."""
    B, T = audio.shape
    N, H, C = FILTER_LENGTH, HOP, CUTOFF

    fwd_cat, inv_real, inv_imag, win, n_pad, c_pad = _build_padded_bases()

    # strength folded into the bias row (constant fold); padded channels stay zero.
    bias_row = jnp.zeros((1, c_pad), jnp.float32).at[0, :C].set(
        jnp.reshape(bias_spec, (C,)).astype(jnp.float32) * float(strength))

    # --- glue: reflect pad + strided frame extraction (== F.pad('reflect') + conv1d) ---
    padded = jnp.pad(audio.astype(jnp.float32), ((0, 0), (N // 2, N // 2)), mode='reflect')
    n_frames = (padded.shape[1] - N) // H + 1
    idx = np.arange(n_frames)[:, None] * H + np.arange(N)[None, :]            # (n_frames, N)
    frames = padded[:, idx].reshape(B * n_frames, N)

    F = B * n_frames
    vmem_cap = _vmem_capacity_bytes()
    tile_f = _pick_tile_f(F, n_pad, c_pad, vmem_cap)
    f_pad = _round_up(F, tile_f)
    grid = (f_pad // tile_f,)

    # bf16 input slab; zero-padded rows / lanes are inert end-to-end.
    frames_pad = jnp.zeros((f_pad, n_pad), jnp.bfloat16).at[:F, :N].set(
        frames.astype(jnp.bfloat16))

    # Per-buffer VMEM accounting: frames x2 + out x2 + bases x1 + bias + f32 temps.
    vmem_needed = (2 * tile_f * n_pad * 2 + 2 * tile_f * n_pad * 4
                   + 2 * (2 * c_pad) * n_pad * 2 + _SUBLANE * c_pad * 4
                   + 2 * tile_f * (2 * c_pad) * 4)
    vmem_limit = int(max(32 << 20, min(int(vmem_cap * 0.85), vmem_needed + (8 << 20))))

    flops = 8 * f_pad * n_pad * c_pad                       # forward + inverse matmuls
    bytes_accessed = (2 * f_pad * n_pad                     # frames bf16 in
                      + 4 * f_pad * n_pad                   # contribs f32 out
                      + 8 * c_pad * n_pad                   # bf16 bases
                      + 4 * c_pad)                          # bias row

    def _run(buffered_residents):
        def resident_spec(shape):
            if buffered_residents:
                return pl.BlockSpec(shape, lambda i: (0, 0), pipeline_mode=pl.Buffered(1))
            return pl.BlockSpec(shape, lambda i: (0, 0))

        out = pl.pallas_call(
            functools.partial(_denoise_kernel, c_pad=c_pad),
            out_shape=jax.ShapeDtypeStruct((f_pad, n_pad), jnp.float32),
            grid=grid,
            in_specs=[
                pl.BlockSpec((tile_f, n_pad), lambda i: (i, 0)),   # frames: tiled, pipelined
                resident_spec((n_pad, 2 * c_pad)),                 # fwd basis: resident
                resident_spec((c_pad, n_pad)),                     # inv real: resident
                resident_spec((c_pad, n_pad)),                     # inv imag: resident
                resident_spec((1, c_pad)),                         # bias*strength: resident
            ],
            out_specs=pl.BlockSpec((tile_f, n_pad), lambda i: (i, 0)),
            compiler_params=pltpu.CompilerParams(
                dimension_semantics=("parallel",),                 # v7x dual-TC sharding
                vmem_limit_bytes=vmem_limit,
            ),
            cost_estimate=pl.CostEstimate(
                flops=flops, transcendentals=f_pad * c_pad, bytes_accessed=bytes_accessed),
        )(frames_pad, fwd_cat, inv_real, inv_imag, bias_row)
        return jax.block_until_ready(out)

    try:
        contribs = _run(True)
    except Exception:
        # Fallback for jax versions without BlockSpec pipeline_mode support.
        contribs = _run(False)

    # --- glue: overlap-add (conv_transpose1d), window-sum normalization, trimming ---
    contribs = contribs[:F, :N].reshape(B, n_frames, N)
    return _overlap_add_normalize(contribs, win, idx)


def _reference_forward(audio, bias_spec, strength=10.0):
    """Pure-JAX mirror of torch Denoiser.forward (validation only)."""
    B, T = audio.shape
    N, H, C = FILTER_LENGTH, HOP, CUTOFF
    fwd_basis, inv_basis, win = _make_stft_bases()
    padded = jnp.pad(audio.astype(jnp.float32), ((0, 0), (N // 2, N // 2)), mode='reflect')
    n_frames = (padded.shape[1] - N) // H + 1
    idx = np.arange(n_frames)[:, None] * H + np.arange(N)[None, :]
    frames = padded[:, idx].reshape(B * n_frames, N)
    hi = jax.lax.Precision.HIGHEST
    real = jnp.dot(frames, jnp.asarray(fwd_basis[:C].T), precision=hi)
    imag = jnp.dot(frames, jnp.asarray(fwd_basis[C:].T), precision=hi)
    mag = jnp.sqrt(real * real + imag * imag)
    denom = jnp.where(mag > 0, mag, 1.0)
    cosp = jnp.where(mag > 0, real / denom, 1.0)
    sinp = jnp.where(mag > 0, imag / denom, 0.0)
    mag_d = jnp.maximum(mag - jnp.reshape(bias_spec, (1, C)) * float(strength), 0.0)
    contribs = (jnp.dot(mag_d * cosp, jnp.asarray(inv_basis[:C]), precision=hi)
                + jnp.dot(mag_d * sinp, jnp.asarray(inv_basis[C:]), precision=hi))
    return _overlap_add_normalize(contribs.reshape(B, n_frames, N), win, idx)


if __name__ == "__main__":
    key = jax.random.PRNGKey(0)
    k_bias, k_audio = jax.random.split(key)

    # TODO(synk): bias_spec is normally the STFT magnitude of the HiFi-GAN vocoder's
    # output on a zero mel input; synthesized here deterministically with the right
    # shape (1, CUTOFF, 1) and nonnegative values (no checkpoint load).
    bias_spec = jnp.abs(jax.random.normal(k_bias, (1, CUTOFF, 1), jnp.float32)) * 0.01
    audio = jax.random.normal(k_audio, (2, 64), jnp.float32)                    # (B, T)

    out = denoiser_forward(audio, bias_spec, strength=10.0)
    jax.block_until_ready(out)
    assert out.shape == (2, 1, 64) and out.dtype == jnp.float32

    # Validate against a pure-JAX mirror of the torch math.  Tolerance widened for
    # the bf16 MXU path (operands rounded to bf16, f32 accumulation, EUP rsqrt);
    # structural mistakes would show O(1) relative errors.
    ref = _reference_forward(audio, bias_spec, strength=10.0)
    err = float(jnp.max(jnp.abs(out - ref)))
    ref_scale = float(jnp.max(jnp.abs(ref)))
    assert err <= 8e-2 * ref_scale + 5e-3, f"kernel/reference mismatch: {err} vs scale {ref_scale}"

    print("KERNEL_OK")
</pallas_src>

<mosaic_0001>
module attributes {stable_mosaic.version = 11 : i64} {
  func.func @_denoise_kernel(%arg0: i32, %arg1: memref<40x128xbf16, #tpu.memory_space<vmem>>, %arg2: memref<128x256xbf16, #tpu.memory_space<vmem>>, %arg3: memref<128x128xbf16, #tpu.memory_space<vmem>>, %arg4: memref<128x128xbf16, #tpu.memory_space<vmem>>, %arg5: memref<1x128xf32, #tpu.memory_space<vmem>>, %arg6: memref<40x128xf32, #tpu.memory_space<vmem>>) attributes {dimension_semantics = [#tpu.dimension_semantics<parallel>], iteration_bounds = array<i64: 1>, scalar_prefetch = 0 : i64, scratch_operands = 0 : i64, tpu.core_type = #tpu.core_type<tc>, window_params = [{transform_indices = @transform_0, window_bounds = array<i64: 40, 128>}, {pipeline_mode = #tpu.pipeline_mode<synchronous>, transform_indices = @transform_1, window_bounds = array<i64: 128, 256>}, {pipeline_mode = #tpu.pipeline_mode<synchronous>, transform_indices = @transform_2, window_bounds = array<i64: 128, 128>}, {pipeline_mode = #tpu.pipeline_mode<synchronous>, transform_indices = @transform_3, window_bounds = array<i64: 128, 128>}, {pipeline_mode = #tpu.pipeline_mode<synchronous>, transform_indices = @transform_4, window_bounds = array<i64: 1, 128>}, {transform_indices = @transform_5, window_bounds = array<i64: 40, 128>}]} {
    %c0 = arith.constant 0 : index
    %c0_0 = arith.constant 0 : index
    %0 = vector.load %arg1[%c0, %c0_0] : memref<40x128xbf16, #tpu.memory_space<vmem>>, vector<40x128xbf16>
    %c0_1 = arith.constant 0 : index
    %c0_2 = arith.constant 0 : index
    %1 = vector.load %arg2[%c0_1, %c0_2] : memref<128x256xbf16, #tpu.memory_space<vmem>>, vector<128x256xbf16>
    %cst = arith.constant dense<0.000000e+00> : vector<40x256xf32>
    %2 = tpu.matmul %0, %1, %cst {dimension_numbers = #tpu.dot_dimension_numbers<[1], [0], [0], [1], [0, 0, 1, 1], [], []>} : vector<40x128xbf16>, vector<128x256xbf16>, vector<40x256xf32> -> vector<40x256xf32>
    %3 = vector.extract_strided_slice %2 {offsets = [0, 0], sizes = [40, 128], strides = [1, 1]} : vector<40x256xf32> to vector<40x128xf32>
    %4 = vector.extract_strided_slice %2 {offsets = [0, 128], sizes = [40, 128], strides = [1, 1]} : vector<40x256xf32> to vector<40x128xf32>
    %5 = arith.mulf %3, %3 : vector<40x128xf32>
    %6 = arith.mulf %4, %4 : vector<40x128xf32>
    %7 = arith.addf %5, %6 : vector<40x128xf32>
    %cst_3 = arith.constant 1.000000e-30 : f32
    %8 = vector.broadcast %cst_3 : f32 to vector<40x128xf32>
    %9 = arith.addf %7, %8 : vector<40x128xf32>
    %10 = math.rsqrt %9 : vector<40x128xf32>
    %11 = arith.mulf %7, %10 : vector<40x128xf32>
    %c0_4 = arith.constant 0 : index
    %c0_5 = arith.constant 0 : index
    %12 = vector.load %arg5[%c0_4, %c0_5] : memref<1x128xf32, #tpu.memory_space<vmem>>, vector<1x128xf32>
    %13 = vector.broadcast %12 : vector<1x128xf32> to vector<40x128xf32>
    %14 = arith.subf %11, %13 : vector<40x128xf32>
    %cst_6 = arith.constant 0.000000e+00 : f32
    %15 = vector.broadcast %cst_6 : f32 to vector<40x128xf32>
    %16 = arith.maximumf %14, %15 : vector<40x128xf32>
    %17 = arith.mulf %16, %10 : vector<40x128xf32>
    %18 = arith.mulf %3, %17 : vector<40x128xf32>
    %19 = arith.truncf %18 : vector<40x128xf32> to vector<40x128xbf16>
    %20 = arith.mulf %4, %17 : vector<40x128xf32>
    %21 = arith.truncf %20 : vector<40x128xf32> to vector<40x128xbf16>
    %c0_7 = arith.constant 0 : index
    %c0_8 = arith.constant 0 : index
    %22 = vector.load %arg3[%c0_7, %c0_8] : memref<128x128xbf16, #tpu.memory_space<vmem>>, vector<128x128xbf16>
    %cst_9 = arith.constant dense<0.000000e+00> : vector<40x128xf32>
    %23 = tpu.matmul %19, %22, %cst_9 {dimension_numbers = #tpu.dot_dimension_numbers<[1], [0], [0], [1], [0, 0, 1, 1], [], []>} : vector<40x128xbf16>, vector<128x128xbf16>, vector<40x128xf32> -> vector<40x128xf32>
    %c0_10 = arith.constant 0 : index
    %c0_11 = arith.constant 0 : index
    %24 = vector.load %arg4[%c0_10, %c0_11] : memref<128x128xbf16, #tpu.memory_space<vmem>>, vector<128x128xbf16>
    %cst_12 = arith.constant dense<0.000000e+00> : vector<40x128xf32>
    %25 = tpu.matmul %21, %24, %cst_12 {dimension_numbers = #tpu.dot_dimension_numbers<[1], [0], [0], [1], [0, 0, 1, 1], [], []>} : vector<40x128xbf16>, vector<128x128xbf16>, vector<40x128xf32> -> vector<40x128xf32>
    %26 = arith.addf %23, %25 : vector<40x128xf32>
    %c0_13 = arith.constant 0 : index
    %c0_14 = arith.constant 0 : index
    %27 = vector.load %arg6[%c0_13, %c0_14] : memref<40x128xf32, #tpu.memory_space<vmem>>, vector<40x128xf32>
    tpu.vector_store %arg6[%c0_13, %c0_14], %26 {strides = array<i32>} : memref<40x128xf32, #tpu.memory_space<vmem>>, vector<40x128xf32>,
    return
  }
  func.func @transform_0(%arg0: i32) -> (i32, i32) {
    %c0_i32 = arith.constant 0 : i32
    %c0_i32_0 = arith.constant 0 : i32
    return %arg0, %c0_i32 : i32, i32
  }
  func.func @transform_1(%arg0: i32) -> (i32, i32) {
    %c0_i32 = arith.constant 0 : i32
    %c0_i32_0 = arith.constant 0 : i32
    %c0_i32_1 = arith.constant 0 : i32
    return %c0_i32, %c0_i32_0 : i32, i32
  }
  func.func @transform_2(%arg0: i32) -> (i32, i32) {
    %c0_i32 = arith.constant 0 : i32
    %c0_i32_0 = arith.constant 0 : i32
    %c0_i32_1 = arith.constant 0 : i32
    return %c0_i32, %c0_i32_0 : i32, i32
  }
  func.func @transform_3(%arg0: i32) -> (i32, i32) {
    %c0_i32 = arith.constant 0 : i32
    %c0_i32_0 = arith.constant 0 : i32
    %c0_i32_1 = arith.constant 0 : i32
    return %c0_i32, %c0_i32_0 : i32, i32
  }
  func.func @transform_4(%arg0: i32) -> (i32, i32) {
    %c0_i32 = arith.constant 0 : i32
    %c0_i32_0 = arith.constant 0 : i32
    %c0_i32_1 = arith.constant 0 : i32
    return %c0_i32, %c0_i32_0 : i32, i32
  }
  func.func @transform_5(%arg0: i32) -> (i32, i32) {
    %c0_i32 = arith.constant 0 : i32
    %c0_i32_0 = arith.constant 0 : i32
    return %arg0, %c0_i32 : i32, i32
  }
}

module attributes {stable_mosaic.version = 11 : i64} {
  func.func @_denoise_kernel(%arg0: i32, %arg1: memref<40x128xbf16, #tpu.memory_space<vmem>>, %arg2: memref<128x256xbf16, #tpu.memory_space<vmem>>, %arg3: memref<128x128xbf16, #tpu.memory_space<vmem>>, %arg4: memref<128x128xbf16, #tpu.memory_space<vmem>>, %arg5: memref<1x128xf32, #tpu.memory_space<vmem>>, %arg6: memref<40x128xf32, #tpu.memory_space<vmem>>) attributes {dimension_semantics = [#tpu.dimension_semantics<parallel>], iteration_bounds = array<i64: 1>, scalar_prefetch = 0 : i64, scratch_operands = 0 : i64, tpu.core_type = #tpu.core_type<tc>, window_params = [{transform_indices = @transform_0, window_bounds = array<i64: 40, 128>}, {pipeline_mode = #tpu.pipeline_mode<synchronous>, transform_indices = @transform_1, window_bounds = array<i64: 128, 256>}, {pipeline_mode = #tpu.pipeline_mode<synchronous>, transform_indices = @transform_2, window_bounds = array<i64: 128, 128>}, {pipeline_mode = #tpu.pipeline_mode<synchronous>, transform_indices = @transform_3, window_bounds = array<i64: 128, 128>}, {pipeline_mode = #tpu.pipeline_mode<synchronous>, transform_indices = @transform_4, window_bounds = array<i64: 1, 128>}, {transform_indices = @transform_5, window_bounds = array<i64: 40, 128>}]} {
    %c0 = arith.constant 0 : index
    %c0_0 = arith.constant 0 : index
    %0 = vector.load %arg1[%c0, %c0_0] : memref<40x128xbf16, #tpu.memory_space<vmem>>, vector<40x128xbf16>
    %c0_1 = arith.constant 0 : index
    %c0_2 = arith.constant 0 : index
    %1 = vector.load %arg2[%c0_1, %c0_2] : memref<128x256xbf16, #tpu.memory_space<vmem>>, vector<128x256xbf16>
    %cst = arith.constant dense<0.000000e+00> : vector<40x256xf32>
    %2 = tpu.matmul %0, %1, %cst {dimension_numbers = #tpu.dot_dimension_numbers<[1], [0], [0], [1], [0, 0, 1, 1], [], []>} : vector<40x128xbf16>, vector<128x256xbf16>, vector<40x256xf32> -> vector<40x256xf32>
    %3 = vector.extract_strided_slice %2 {offsets = [0, 0], sizes = [40, 128], strides = [1, 1]} : vector<40x256xf32> to vector<40x128xf32>
    %4 = vector.extract_strided_slice %2 {offsets = [0, 128], sizes = [40, 128], strides = [1, 1]} : vector<40x256xf32> to vector<40x128xf32>
    %5 = arith.mulf %3, %3 : vector<40x128xf32>
    %6 = arith.mulf %4, %4 : vector<40x128xf32>
    %7 = arith.addf %5, %6 : vector<40x128xf32>
    %cst_3 = arith.constant 1.000000e-30 : f32
    %8 = vector.broadcast %cst_3 : f32 to vector<40x128xf32>
    %9 = arith.addf %7, %8 : vector<40x128xf32>
    %10 = math.rsqrt %9 : vector<40x128xf32>
    %11 = arith.mulf %7, %10 : vector<40x128xf32>
    %c0_4 = arith.constant 0 : index
    %c0_5 = arith.constant 0 : index
    %12 = vector.load %arg5[%c0_4, %c0_5] : memref<1x128xf32, #tpu.memory_space<vmem>>, vector<1x128xf32>
    %13 = vector.broadcast %12 : vector<1x128xf32> to vector<40x128xf32>
    %14 = arith.subf %11, %13 : vector<40x128xf32>
    %cst_6 = arith.constant 0.000000e+00 : f32
    %15 = vector.broadcast %cst_6 : f32 to vector<40x128xf32>
    %16 = arith.maximumf %14, %15 : vector<40x128xf32>
    %17 = arith.mulf %16, %10 : vector<40x128xf32>
    %18 = arith.mulf %3, %17 : vector<40x128xf32>
    %19 = arith.truncf %18 : vector<40x128xf32> to vector<40x128xbf16>
    %20 = arith.mulf %4, %17 : vector<40x128xf32>
    %21 = arith.truncf %20 : vector<40x128xf32> to vector<40x128xbf16>
    %c0_7 = arith.constant 0 : index
    %c0_8 = arith.constant 0 : index
    %22 = vector.load %arg3[%c0_7, %c0_8] : memref<128x128xbf16, #tpu.memory_space<vmem>>, vector<128x128xbf16>
    %cst_9 = arith.constant dense<0.000000e+00> : vector<40x128xf32>
    %23 = tpu.matmul %19, %22, %cst_9 {dimension_numbers = #tpu.dot_dimension_numbers<[1], [0], [0], [1], [0, 0, 1, 1], [], []>} : vector<40x128xbf16>, vector<128x128xbf16>, vector<40x128xf32> -> vector<40x128xf32>
    %c0_10 = arith.constant 0 : index
    %c0_11 = arith.constant 0 : index
    %24 = vector.load %arg4[%c0_10, %c0_11] : memref<128x128xbf16, #tpu.memory_space<vmem>>, vector<128x128xbf16>
    %cst_12 = arith.constant dense<0.000000e+00> : vector<40x128xf32>
    %25 = tpu.matmul %21, %24, %cst_12 {dimension_numbers = #tpu.dot_dimension_numbers<[1], [0], [0], [1], [0, 0, 1, 1], [], []>} : vector<40x128xbf16>, vector<128x128xbf16>, vector<40x128xf32> -> vector<40x128xf32>
    %26 = arith.addf %23, %25 : vector<40x128xf32>
    %c0_13 = arith.constant 0 : index
    %c0_14 = arith.constant 0 : index
    %27 = vector.load %arg6[%c0_13, %c0_14] : memref<40x128xf32, #tpu.memory_space<vmem>>, vector<40x128xf32>
    tpu.vector_store %arg6[%c0_13, %c0_14], %26 {strides = array<i32>} : memref<40x128xf32, #tpu.memory_space<vmem>>, vector<40x128xf32>,
    return
  }
  func.func @transform_0(%arg0: i32) -> (i32, i32) {
    %c0_i32 = arith.constant 0 : i32
    %c0_i32_0 = arith.constant 0 : i32
    return %arg0, %c0_i32 : i32, i32
  }
  func.func @transform_1(%arg0: i32) -> (i32, i32) {
    %c0_i32 = arith.constant 0 : i32
    %c0_i32_0 = arith.constant 0 : i32
    %c0_i32_1 = arith.constant 0 : i32
    return %c0_i32, %c0_i32_0 : i32, i32
  }
  func.func @transform_2(%arg0: i32) -> (i32, i32) {
    %c0_i32 = arith.constant 0 : i32
    %c0_i32_0 = arith.constant 0 : i32
    %c0_i32_1 = arith.constant 0 : i32
    return %c0_i32, %c0_i32_0 : i32, i32
  }
  func.func @transform_3(%arg0: i32) -> (i32, i32) {
    %c0_i32 = arith.constant 0 : i32
    %c0_i32_0 = arith.constant 0 : i32
    %c0_i32_1 = arith.constant 0 : i32
    return %c0_i32, %c0_i32_0 : i32, i32
  }
  func.func @transform_4(%arg0: i32) -> (i32, i32) {
    %c0_i32 = arith.constant 0 : i32
    %c0_i32_0 = arith.constant 0 : i32
    %c0_i32_1 = arith.constant 0 : i32
    return %c0_i32, %c0_i32_0 : i32, i32
  }
  func.func @transform_5(%arg0: i32) -> (i32, i32) {
    %c0_i32 = arith.constant 0 : i32
    %c0_i32_0 = arith.constant 0 : i32
    return %arg0, %c0_i32 : i32, i32
  }
}

</mosaic_0001>

<bundles_post_ra>
// kernel: tpu_custom_call.1
= control target key start
LH: loop header
LB: loop body
LE: loop exit
PB: predicated region body
PF: predicated region fallthrough
CT: control target
= control target key end

     0   :  { %10 = vsyncpa [#allocation3], 0  ;;  %s1103_s0 = inlined_call_operand.hbm [shape: bf16[40,128], index: 0, kind: input, shape index: {}]   ;;  %s1104_s1 = inlined_call_operand.hbm [shape: bf16[128,256], index: 1, kind: input, shape index: {}]   ;;  %s1105_s2 = inlined_call_operand.hbm [shape: bf16[128,128], index: 2, kind: input, shape index: {}]   ;;  %s1106_s3 = inlined_call_operand.hbm [shape: bf16[128,128], index: 3, kind: input, shape index: {}]   ;;  %s1107_s4 = inlined_call_operand.vmem [shape: f32[1,128], index: 4, kind: input, shape index: {}]   ;;  %s1108_s5 = inlined_call_operand.hbm [shape: f32[40,128], index: 5, kind: output, shape index: {}]  }
   0x1   :  { %11 = vsyncpa [#allocation6], 0 }
   0x2   :  { %12 = vsyncpa [#allocation9], 0 }
   0x3   :  { %13 = vsyncpa [#allocation4], 0  ;;  %s908_s18 = smov [#allocation5]   ;;  %s790_s22 = scalar_lea.hbm %s1104_s1, 2048 }
   0x4   :  { %s31_s19 = sshll.u32 %s908_s18, 4  ;;  %p791_p0 = scmp.ne.s32.totalorder %s1104_s1, %s790_s22  ;;  %s32_s19 = int_to_ptr.vmem [resolvable:$true] %s31_s19 }
   0x5   :  { %p794_p1 = scmp.lt.u32.totalorder %s790_s22, %s1104_s1 }
   0x7   :  { %p796_p2 = pnand %p794_p1, %p791_p0 }
   0x9   :  { %799 = shalt.err (!%p796_p2)
}
   0xa   :  { %s800_s27 = scalar_lea.vmem %s32_s19, 2048  ;;  %p805_p4 = scmp.lt.s32.totalorder %s32_s19, %s32_s19 }
   0xb   :  { %p801_p3 = scmp.ne.s32.totalorder %s32_s19, %s800_s27  ;;  %p806_p5 = scmp.lt.s32.totalorder %s800_s27, %s800_s27 }
   0xd   :  { %p807_p6 = por %p806_p5, %p805_p4 }
   0xf   :  { %p808_p7 = pnand %p807_p6, %p801_p3 }
  0x11   :  { %811 = shalt.err (!%p808_p7)
}
  0x12   :  { %s909_s28 = smov 128   ;;  %s910_s29 = smov 8  }
  0x13   :  { %37 = dma.hbm_to_vmem [thread:$0]  %s1104_s1, 2048, %s32_s19, [#allocation6], %s909_s28, %s909_s28, %s910_s29  }
  0x14   :  { %s911_s7 = smov [#allocation2]   ;;  %s812_s11 = scalar_lea.hbm %s1103_s0, 320 }
  0x15   :  { %s19_s8 = sshll.u32 %s911_s7, 4  ;;  %p813_p8 = scmp.ne.s32.totalorder %s1103_s0, %s812_s11  ;;  %s20_s8 = int_to_ptr.vmem [resolvable:$true] %s19_s8 }
  0x16   :  { %p816_p9 = scmp.lt.u32.totalorder %s812_s11, %s1103_s0 }
  0x18   :  { %p818_p10 = pnand %p816_p9, %p813_p8 }
  0x1a   :  { %821 = shalt.err (!%p818_p10)
}
  0x1b   :  { %s822_s16 = scalar_lea.vmem %s20_s8, 320  ;;  %p827_p12 = scmp.lt.s32.totalorder %s20_s8, %s20_s8 }
  0x1c   :  { %p823_p11 = scmp.ne.s32.totalorder %s20_s8, %s822_s16  ;;  %p828_p13 = scmp.lt.s32.totalorder %s822_s16, %s822_s16 }
  0x1e   :  { %p829_p0 = por %p828_p13, %p827_p12 }
  0x20   :  { %p830_p1 = pnand %p829_p0, %p823_p11 }
  0x22   :  { %833 = shalt.err (!%p830_p1)
}
  0x23   :  { %s912_s1 = smov 64   ;;  %s913_s17 = smov 4  }
  0x24   :  { %25 = dma.hbm_to_vmem [thread:$0]  %s1103_s0, 320, %s20_s8, [#allocation3], %s912_s1, %s912_s1, %s913_s17  }
  0x25   :  { %s914_s20 = smov [#allocation7]   ;;  %s915_s22 = smov [#allocation8]  }
  0x26   :  { %s43_s21 = sshll.u32 %s914_s20, 4  ;;  %s55_s23 = sshll.u32 %s915_s22, 4  ;;  %s44_s21 = int_to_ptr.vmem [resolvable:$true] %s43_s21  ;;  %s980_s23 = int_to_ptr.vmem [resolvable:$true] %s55_s23 }
  0x27   :  { %s834_s26 = scalar_lea.hbm %s1105_s2, 1024 }
  0x28   :  { %p835_p2 = scmp.ne.s32.totalorder %s1105_s2, %s834_s26  ;;  %p838_p3 = scmp.lt.u32.totalorder %s834_s26, %s1105_s2 }
  0x2a   :  { %p840_p4 = pnand %p838_p3, %p835_p2 }
  0x2c   :  { %843 = shalt.err (!%p840_p4)
}
  0x2d   :  { %s844_s0 = scalar_lea.vmem %s44_s21, 1024  ;;  %p849_p6 = scmp.lt.s32.totalorder %s44_s21, %s44_s21 }
  0x2e   :  { %p845_p5 = scmp.ne.s32.totalorder %s44_s21, %s844_s0  ;;  %p850_p7 = scmp.lt.s32.totalorder %s844_s0, %s844_s0 }
  0x30   :  { %p851_p8 = por %p850_p7, %p849_p6 }
  0x32   :  { %p852_p9 = pnand %p851_p8, %p845_p5 }
  0x34   :  { %855 = shalt.err (!%p852_p9)
}
  0x35   :  { %49 = dma.hbm_to_vmem [thread:$0]  %s1105_s2, 1024, %s44_s21, [#allocation6], %s912_s1, %s912_s1, %s913_s17  }
  0x36   :  { %s856_s12 = scalar_lea.hbm %s1106_s3, 1024 }
  0x37   :  { %p857_p10 = scmp.ne.s32.totalorder %s1106_s3, %s856_s12  ;;  %p860_p11 = scmp.lt.u32.totalorder %s856_s12, %s1106_s3 }
  0x39   :  { %p862_p12 = pnand %p860_p11, %p857_p10 }
  0x3b   :  { %865 = shalt.err (!%p862_p12)
}
  0x3c   :  { %s866_s18 = scalar_lea.vmem %s980_s23, 1024  ;;  %p871_p0 = scmp.lt.s32.totalorder %s980_s23, %s980_s23 }
  0x3d   :  { %p867_p13 = scmp.ne.s32.totalorder %s980_s23, %s866_s18  ;;  %p872_p1 = scmp.lt.s32.totalorder %s866_s18, %s866_s18 }
  0x3f   :  { %p873_p2 = por %p872_p1, %p871_p0 }
  0x41   :  { %p874_p3 = pnand %p873_p2, %p867_p13 }
  0x43   :  { %877 = shalt.err (!%p874_p3)
}
  0x44   :  { %61 = dma.hbm_to_vmem [thread:$0]  %s1106_s3, 1024, %s980_s23, [#allocation9], %s912_s1, %s912_s1, %s913_s17  }
  0x45   :  { %900 = dma.done.wait [#allocation3], 320  }
  0x46   :  { %901 = vsyncadd [#allocation3], 4294966976 }
  0x47   :  { %902 = dma.done.wait [#allocation6], 3072  }
  0x48   :  { %903 = vsyncadd [#allocation6], 4294964224 }
  0x49   :  { %904 = dma.done.wait [#allocation9], 1024  }
  0x4a   :  { %905 = vsyncadd [#allocation9], 4294966272  ;;  %v916_v0 = vmov 0   ;;  %v737_v1 = vld [vmem:[#allocation5 + $0x4] ss:$8 sps:$4 sm:$0xff]   ;;  %v762_v18 = vld [vmem:[#allocation2 + $0x8] sm:$0xff]  }
  0x4b   :  { %226 = vmatprep.mubr.bf16.mxu0 %v916_v0  ;;  %v739_v2 = vld [vmem:[#allocation5] ss:$8 sps:$4 sm:$0xff]   ;;  %194 = vmatprep.subr.bf16.mxu0 %v737_v1  ;;  %v740_v3 = vld [vmem:[#allocation5 + $0x14] ss:$8 sps:$4 sm:$0xff]   ;;  %v742_v4 = vld [vmem:[#allocation5 + $0x10] ss:$8 sps:$4 sm:$0xff]  }
  0x4c   :  { %195 = vmatpush1.bf16.msra.mxu0 %v739_v2  ;;  %v743_v5 = vld [vmem:[#allocation5 + $0x24] ss:$8 sps:$4 sm:$0xff]   ;;  %v745_v6 = vld [vmem:[#allocation5 + $0x20] ss:$8 sps:$4 sm:$0xff]   ;;  %v746_v7 = vld [vmem:[#allocation5 + $0x34] ss:$8 sps:$4 sm:$0xff]  }
  0x4d   :  { %196 = vmatprep.subr.bf16.mxu0 %v740_v3  ;;  %v748_v8 = vld [vmem:[#allocation5 + $0x30] ss:$8 sps:$4 sm:$0xff]   ;;  %v749_v9 = vld [vmem:[#allocation5 + $0x44] ss:$8 sps:$4 sm:$0xff]   ;;  %v751_v10 = vld [vmem:[#allocation5 + $0x40] ss:$8 sps:$4 sm:$0xff]  }
  0x4e   :  { %v752_v11 = vld [vmem:[#allocation5 + $0x54] ss:$8 sps:$4 sm:$0xff]   ;;  %v754_v12 = vld [vmem:[#allocation5 + $0x50] ss:$8 sps:$4 sm:$0xff]   ;;  %v755_v13 = vld [vmem:[#allocation5 + $0x64] ss:$8 sps:$4 sm:$0xff]  }
  0x4f   :  { %v757_v14 = vld [vmem:[#allocation5 + $0x60] ss:$8 sps:$4 sm:$0xff]   ;;  %v758_v15 = vld [vmem:[#allocation5 + $0x74] ss:$8 sps:$4 sm:$0xff]   ;;  %v760_v16 = vld [vmem:[#allocation5 + $0x70] ss:$8 sps:$4 sm:$0xff]  }
  0x50   :  { %197 = vmatpush1.bf16.msra.mxu0 %v742_v4  ;;  %v761_v17 = vld [vmem:[#allocation2] sm:$0xff]   ;;  %v763_v19 = vld [vmem:[#allocation2 + $0x10] ss:$0 sps:$4 sm:$0xff]   ;;  %v764_v20 = vld [vmem:[#allocation8] sm:$0xff]   ;;  %v917_v21 = vmov 0.0   ;;  %vm918_vm0 = vmmov 0  }
  0x51   :  { %198 = vmatprep.subr.bf16.mxu0 %v743_v5  ;;  %645 = vmatprep.subr.bf16.mxu1 %v917_v21  ;;  %v1019_v22 = vld [vmem:[#allocation7] sm:$0xff]   ;;  %v766_v23 = vld [vmem:[#allocation8 + $0x8] sm:$0xff]   ;;  %v768_v25 = vld [vmem:[#allocation8 + $0x10] sm:$0xff]  }
  0x52   :  { %646 = vmatpush3.bf16.msra.mxu1 %v764_v20  ;;  %v1024_v24 = vld [vmem:[#allocation7 + $0x8] sm:$0xff]   ;;  %v1029_v26 = vld [vmem:[#allocation7 + $0x10] sm:$0xff]   ;;  %v770_v27 = vld [vmem:[#allocation8 + $0x18] sm:$0xff]   ;;  %661 = vmatprep.mubr.msk.bf16.mxu1 %vm918_vm0, %v917_v21 }
  0x53   :  { %647 = vmatprep.subr.bf16.mxu1 %v917_v21  ;;  %v1034_v28 = vld [vmem:[#allocation7 + $0x18] sm:$0xff]   ;;  %v772_v29 = vld [vmem:[#allocation8 + $0x20] sm:$0xff]   ;;  %v774_v31 = vld [vmem:[#allocation8 + $0x28] sm:$0xff]  }
  0x54   :  { %199 = vmatpush1.bf16.msra.mxu0 %v745_v6  ;;  %v1039_v30 = vld [vmem:[#allocation7 + $0x20] sm:$0xff]   ;;  %v1044_v32 = vld [vmem:[#allocation7 + $0x28] sm:$0xff]   ;;  %v776_v33 = vld [vmem:[#allocation8 + $0x30] sm:$0xff]  }
  0x55   :  { %200 = vmatprep.subr.bf16.mxu0 %v746_v7  ;;  %v1049_v34 = vld [vmem:[#allocation7 + $0x30] sm:$0xff]   ;;  %v778_v35 = vld [vmem:[#allocation8 + $0x38] sm:$0xff]   ;;  %v606_v1 = vld [vmem:[%s1107_s4] ss:$0 sm:$0xff]  ;;  %s919_s4 = smov [#allocation10]  }
  0x56   :  { %648 = vmatpush3.bf16.msra.mxu1 %v766_v23  ;;  %v1054_v36 = vld [vmem:[#allocation7 + $0x38] sm:$0xff]   ;;  %s573_s17 = sshll.u32 %s919_s4, 4  ;;  %s574_s17 = int_to_ptr.vmem [resolvable:$true] %s573_s17 }
  0x57   :  { %649 = vmatprep.subr.bf16.mxu1 %v917_v21  ;;  %s878_s20 = scalar_lea.vmem %s574_s17, 640  ;;  %p883_p5 = scmp.lt.s32.totalorder %s574_s17, %s574_s17 }
  0x58   :  { %201 = vmatpush1.bf16.msra.mxu0 %v748_v8  ;;  %p879_p4 = scmp.ne.s32.totalorder %s574_s17, %s878_s20  ;;  %p884_p6 = scmp.lt.s32.totalorder %s878_s20, %s878_s20 }
  0x59   :  { %202 = vmatprep.subr.bf16.mxu0 %v749_v9 }
  0x5a   :  { %650 = vmatpush3.bf16.msra.mxu1 %v768_v25  ;;  %p885_p7 = por %p884_p6, %p883_p5 }
  0x5b   :  { %651 = vmatprep.subr.bf16.mxu1 %v917_v21 }
  0x5c   :  { %203 = vmatpush1.bf16.msra.mxu0 %v751_v10  ;;  %p886_p8 = pnand %p885_p7, %p879_p4 }
  0x5d   :  { %204 = vmatprep.subr.bf16.mxu0 %v752_v11 }
  0x5e   :  { %652 = vmatpush3.bf16.msra.mxu1 %v770_v27 }
  0x5f   :  { %653 = vmatprep.subr.bf16.mxu1 %v917_v21 }
  0x60   :  { %205 = vmatpush1.bf16.msra.mxu0 %v754_v12 }
  0x61   :  { %206 = vmatprep.subr.bf16.mxu0 %v755_v13 }
  0x62   :  { %654 = vmatpush3.bf16.msra.mxu1 %v772_v29 }
  0x63   :  { %655 = vmatprep.subr.bf16.mxu1 %v917_v21 }
  0x64   :  { %207 = vmatpush1.bf16.msra.mxu0 %v757_v14 }
  0x65   :  { %208 = vmatprep.subr.bf16.mxu0 %v758_v15 }
  0x66   :  { %656 = vmatpush3.bf16.msra.mxu1 %v774_v31 }
  0x67   :  { %657 = vmatprep.subr.bf16.mxu1 %v917_v21 }
  0x68   :  { %209 = vmatpush1.bf16.msra.mxu0 %v760_v16 }
  0x69   :  { %673 = vmatprep.subr.bf16.mxu0 %v917_v21 }
  0x6a   :  { %658 = vmatpush3.bf16.msra.mxu1 %v776_v33 }
  0x6b   :  { %227 = vmatmul.mubr.bf16.vlgmr.msra.gmra.mrb[0].mxu0 %v761_v17  ;;  %659 = vmatprep.subr.bf16.mxu1 %v917_v21 }
  0x6c   :  { %236 = vmatprep.mubr.bf16.mxu0 %v916_v0  ;;  %674 = vmatpush3.bf16.msra.mxu0 %v1019_v22 }
  0x6d   :  { %675 = vmatprep.subr.bf16.mxu0 %v917_v21 }
  0x6e   :  { %660 = vmatpush3.bf16.msra.mxu1 %v778_v35 }
  0x6f   :  { %701 = vmatprep.subr.bf16.mxu1 %v917_v21 }
  0x70   :  { %676 = vmatpush3.bf16.msra.mxu0 %v1024_v24 }
  0x71   :  { %677 = vmatprep.subr.bf16.mxu0 %v917_v21 }
  0x73   :  { %237 = vmatmul.mubr.bf16.gmra.mrb[4].mxu0 %v762_v18 }
  0x74   :  { %246 = vmatprep.mubr.bf16.mxu0 %v916_v0  ;;  %678 = vmatpush3.bf16.msra.mxu0 %v1029_v26 }
  0x75   :  { %679 = vmatprep.subr.bf16.mxu0 %v917_v21 }
  0x78   :  { %680 = vmatpush3.bf16.msra.mxu0 %v1034_v28 }
  0x79   :  { %681 = vmatprep.subr.bf16.mxu0 %v917_v21 }
  0x7b   :  { %247 = vmatmul.mubr.bf16.gmra.mrb[8].mxu0 %v763_v19 }
  0x7c   :  { %682 = vmatpush3.bf16.msra.mxu0 %v1039_v30  ;;  %689 = vmatprep.mubr.msk.bf16.mxu0 %vm918_vm0, %v917_v21 }
  0x7d   :  { %683 = vmatprep.subr.bf16.mxu0 %v917_v21 }
  0x80   :  { %684 = vmatpush3.bf16.msra.mxu0 %v1044_v32 }
  0x81   :  { %685 = vmatprep.subr.bf16.mxu0 %v917_v21 }
  0x84   :  { %686 = vmatpush3.bf16.msra.mxu0 %v1049_v34 }
  0x85   :  { %687 = vmatprep.subr.bf16.mxu0 %v917_v21 }
  0x88   :  { %688 = vmatpush3.bf16.msra.mxu0 %v1054_v36 }
 0x13e   :  { %v228_v37 = vpop.f32.mrb[0].mxu0 }
 0x13f   :  { %v255_v38 = vmul.f32 %v228_v37, %v228_v37  ;;  %v230_v39 = vpop.f32.mrb[1].mxu0 }
 0x140   :  { %v260_v40 = vmul.f32 %v230_v39, %v230_v39  ;;  %v232_v41 = vpop.f32.mrb[2].mxu0 }
 0x141   :  { %v256_v42 = vmul.f32 %v232_v41, %v232_v41  ;;  %v234_v43 = vpop.f32.mrb[3].mxu0 }
 0x142   :  { %v265_v44 = vadd.f32 %v260_v40, %v255_v38  ;;  %v261_v45 = vmul.f32 %v234_v43, %v234_v43 }
 0x144   :  { %v270_v46 = vadd.f32 1e-30, %v265_v44  ;;  %v266_v47 = vadd.f32 %v261_v45, %v256_v42 }
 0x146   :  { %780 = vrsqrt.f32 %v270_v46  ;;  %v271_v48 = vadd.f32 1e-30, %v266_v47  ;;  %v238_v49 = vpop.f32.mrb[4].mxu0 }
 0x147   :  { %v257_v50 = vmul.f32 %v238_v49, %v238_v49  ;;  %v240_v51 = vpop.f32.mrb[5].mxu0 }
 0x148   :  { %782 = vrsqrt.f32 %v271_v48  ;;  %v262_v52 = vmul.f32 %v240_v51, %v240_v51  ;;  %v242_v53 = vpop.f32.mrb[6].mxu0 }
 0x149   :  { %v258_v54 = vmul.f32 %v242_v53, %v242_v53  ;;  %v244_v55 = vpop.f32.mrb[7].mxu0 }
 0x14a   :  { %v267_v56 = vadd.f32 %v262_v52, %v257_v50  ;;  %v263_v57 = vmul.f32 %v244_v55, %v244_v55 }
 0x14c   :  { %v272_v58 = vadd.f32 1e-30, %v267_v56  ;;  %v268_v59 = vadd.f32 %v263_v57, %v258_v54 }
 0x14e   :  { %784 = vrsqrt.f32 %v272_v58  ;;  %v273_v60 = vadd.f32 1e-30, %v268_v59  ;;  %v248_v61 = vpop.f32.mrb[8].mxu0 }
 0x14f   :  { %v259_v62 = vmul.f32 %v248_v61, %v248_v61  ;;  %v250_v63 = vpop.f32.mrb[9].mxu0 }
 0x150   :  { %v781_v0 = vpop.eup %780  ;;  %786 = vrsqrt.f32 %v273_v60  ;;  %v264_v2 = vmul.f32 %v250_v63, %v250_v63  ;;  %v252_v3 = vpop.f32.mrb[10].mxu0 }
 0x151   :  { %v280_v4 = vmul.f32 %v781_v0, %v265_v44  ;;  %v253_v5 = vpop.f32.mrb[11].mxu0 }
 0x152   :  { %v783_v6 = vpop.eup %782  ;;  %v269_v7 = vadd.f32 %v264_v2, %v259_v62 }
 0x153   :  { %v292_v8 = vsub.f32 %v280_v4, %v606_v1  ;;  %v281_v9 = vmul.f32 %v783_v6, %v266_v47 }
 0x154   :  { %v274_v10 = vadd.f32 1e-30, %v269_v7 }
 0x155   :  { %v297_v11 = vmax.f32 %v292_v8, 0.0  ;;  %v293_v12 = vsub.f32 %v281_v9, %v606_v1 }
 0x156   :  { %788 = vrsqrt.f32 %v274_v10 }
 0x157   :  { %v302_v13 = vmul.f32 %v781_v0, %v297_v11  ;;  %v298_v14 = vmax.f32 %v293_v12, 0.0 }
 0x158   :  { %v785_v15 = vpop.eup %784 }
 0x159   :  { %v307_v16 = vmul.f32 %v302_v13, %v228_v37  ;;  %v315_v17 = vmul.f32 %v302_v13, %v230_v39  ;;  %v303_v18 = vmul.f32 %v783_v6, %v298_v14  ;;  %v282_v19 = vmul.f32 %v785_v15, %v267_v56 }
 0x15a   :  { %v787_v20 = vpop.eup %786 }
 0x15b   :  { %v308_v23 = vmul.f32 %v303_v18, %v232_v41  ;;  %v316_v25 = vmul.f32 %v303_v18, %v234_v43  ;;  %v294_v27 = vsub.f32 %v282_v19, %v606_v1  ;;  %v283_v29 = vmul.f32 %v787_v20, %v268_v59 }
 0x15d   :  { %v312_v31 = vpack.c.bf16 %v308_v23, %v307_v16  ;;  %v320_v33 = vpack.c.bf16 %v316_v25, %v315_v17  ;;  %v299_v35 = vmax.f32 %v294_v27, 0.0  ;;  %v295_v38 = vsub.f32 %v283_v29, %v606_v1 }
 0x15f   :  { %v304_v40 = vmul.f32 %v785_v15, %v299_v35  ;;  %v300_v42 = vmax.f32 %v295_v38, 0.0  ;;  %662 = vmatmul.mubr.bf16.vlgmr.msra.gmra.mrb[0].mxu1 %v320_v33  ;;  %690 = vmatmul.mubr.bf16.vlgmr.msra.gmra.mrb[12].mxu0 %v312_v31 }
 0x160   :  { %v789_v44 = vpop.eup %788  ;;  %709 = vmatpush3.bf16.msra.mxu1 %v1019_v22  ;;  %665 = vmatprep.mubr.msk.bf16.mxu1 %vm918_vm0, %v917_v21 }
 0x161   :  { %v309_v37 = vmul.f32 %v304_v40, %v238_v49  ;;  %v317_v39 = vmul.f32 %v304_v40, %v240_v51  ;;  %v305_v41 = vmul.f32 %v787_v20, %v300_v42  ;;  %v284_v43 = vmul.f32 %v789_v44, %v269_v7  ;;  %702 = vmatprep.subr.bf16.mxu1 %v917_v21 }
 0x162   :  { %693 = vmatprep.mubr.msk.bf16.mxu0 %vm918_vm0, %v917_v21 }
 0x163   :  { %v310_v45 = vmul.f32 %v305_v41, %v242_v53  ;;  %v318_v46 = vmul.f32 %v305_v41, %v244_v55  ;;  %v296_v47 = vsub.f32 %v284_v43, %v606_v1 }
 0x164   :  { %710 = vmatpush3.bf16.msra.mxu1 %v1024_v24 }
 0x165   :  { %v321_v48 = vpack.c.bf16 %v318_v46, %v317_v39  ;;  %v301_v50 = vmax.f32 %v296_v47, 0.0  ;;  %703 = vmatprep.subr.bf16.mxu1 %v917_v21  ;;  %v313_v22 = vpack.c.bf16 %v310_v45, %v309_v37 }
 0x167   :  { %v306_v52 = vmul.f32 %v789_v44, %v301_v50  ;;  %666 = vmatmul.mubr.bf16.gmra.mrb[4].mxu1 %v321_v48  ;;  %694 = vmatmul.mubr.bf16.gmra.mrb[16].mxu0 %v313_v22 }
 0x168   :  { %711 = vmatpush3.bf16.msra.mxu1 %v1029_v26  ;;  %669 = vmatprep.mubr.msk.bf16.mxu1 %vm918_vm0, %v917_v21 }
 0x169   :  { %v311_v49 = vmul.f32 %v306_v52, %v248_v61  ;;  %v319_v51 = vmul.f32 %v306_v52, %v250_v63  ;;  %704 = vmatprep.subr.bf16.mxu1 %v917_v21 }
 0x16b   :  { %v322_v24 = vpack.c.bf16 %v319_v51, %v319_v51  ;;  %v314_v26 = vpack.c.bf16 %v311_v49, %v311_v49 }
 0x16c   :  { %712 = vmatpush3.bf16.msra.mxu1 %v1034_v28 }
 0x16d   :  { %705 = vmatprep.subr.bf16.mxu1 %v917_v21 }
 0x16f   :  { %670 = vmatmul.mubr.bf16.gmra.mrb[8].mxu1 %v322_v24 }
 0x170   :  { %713 = vmatpush3.bf16.msra.mxu1 %v1039_v30  ;;  %697 = vmatprep.mubr.msk.bf16.mxu1 %vm918_vm0, %v917_v21 }
 0x171   :  { %706 = vmatprep.subr.bf16.mxu1 %v917_v21 }
 0x174   :  { %714 = vmatpush3.bf16.msra.mxu1 %v1044_v32 }
 0x175   :  { %707 = vmatprep.subr.bf16.mxu1 %v917_v21 }
 0x178   :  { %715 = vmatpush3.bf16.msra.mxu1 %v1049_v34 }
 0x179   :  { %708 = vmatprep.subr.bf16.mxu1 %v917_v21 }
 0x17c   :  { %716 = vmatpush3.bf16.msra.mxu1 %v1054_v36 }
 0x17f   :  { %698 = vmatmul.mubr.bf16.vlgmr.msra.gmra.mrb[8].mxu1 %v314_v26 }
 0x232   :  { %v437_v28 = vpop.f32.mrb[0].mxu1  ;;  %v541_v53 = vpop.f32.mrb[12].mxu0 }
 0x233   :  { %v542_v30 = vadd.f32 %v541_v53, %v437_v28  ;;  %v663_v54 = vpop.f32.mrb[1].mxu1  ;;  %v691_v55 = vpop.f32.mrb[13].mxu0 }
 0x234   :  { %v440_v56 = vpop.f32.mrb[2].mxu1  ;;  %v544_v57 = vpop.f32.mrb[14].mxu0 }
 0x235   :  { %563 = vst [vmem:[#allocation10] sm:$0xff] %v542_v30  ;;  %v545_v58 = vadd.f32 %v544_v57, %v440_v56  ;;  %v664_v32 = vpop.f32.mrb[3].mxu1  ;;  %v692_v59 = vpop.f32.mrb[15].mxu0 }
 0x237   :  { %564 = vst [vmem:[#allocation10 + $0x8] sm:$0xff] %v545_v58 }
 0x23a   :  { %v445_v60 = vpop.f32.mrb[4].mxu1  ;;  %v549_v34 = vpop.f32.mrb[16].mxu0 }
 0x23b   :  { %v550_v61 = vadd.f32 %v549_v34, %v445_v60  ;;  %v667_v21 = vpop.f32.mrb[5].mxu1  ;;  %v695_v62 = vpop.f32.mrb[17].mxu0 }
 0x23c   :  { %v448_v36 = vpop.f32.mrb[6].mxu1  ;;  %v552_v63 = vpop.f32.mrb[18].mxu0 }
 0x23d   :  { %565 = vst [vmem:[#allocation10 + $0x10] sm:$0xff] %v550_v61  ;;  %v553_v0 = vadd.f32 %v552_v63, %v448_v36  ;;  %v668_v1 = vpop.f32.mrb[7].mxu1  ;;  %v696_v2 = vpop.f32.mrb[19].mxu0 }
 0x23f   :  { %566 = vst [vmem:[#allocation10 + $0x18] sm:$0xff] %v553_v0 }
 0x252   :  { %v557_v3 = vpop.f32.mrb[8].mxu1 }
 0x253   :  { %567 = vst [vmem:[#allocation10 + $0x20] sm:$0xff] %v557_v3  ;;  %v699_v4 = vpop.f32.mrb[9].mxu1 }
 0x254   :  { %v560_v5 = vpop.f32.mrb[10].mxu1 }
 0x255   :  { %889 = shalt.err (!%p886_p8)
}
 0x256   :  { %s890_s23 = scalar_lea.hbm %s1108_s5, 640 }
 0x257   :  { %p891_p9 = scmp.ne.s32.totalorder %s1108_s5, %s890_s23  ;;  %p894_p10 = scmp.lt.u32.totalorder %s890_s23, %s1108_s5 }
 0x259   :  { %p896_p11 = pnand %p894_p10, %p891_p9 }
 0x25b   :  { %899 = shalt.err (!%p896_p11)
}
 0x25c   :  { %579 = dma.vmem_to_hbm [thread:$0]  %s574_s17, 640, %s1108_s5, [#allocation4], %s909_s28, %s909_s28, %s910_s29   ;;  %v700_v6 = vpop.f32.mrb[11].mxu1 }
 0x25d   :  { %906 = dma.done.wait [#allocation4], 640  }
 0x25e   :  { %907 = vsyncadd [#allocation4], 4294966656 }
 0x25f   :  { %583 = vsyncpa [#allocation3], 1 }
 0x260   :  { %584 = vsyncpa [#allocation6], 1 }
 0x261   :  { %585 = vsyncpa [#allocation9], 1 }
 0x262   :  { %586 = vsyncpa [#allocation4], 1 }

// kernel: tpu_custom_call.1
= control target key start
LH: loop header
LB: loop body
LE: loop exit
PB: predicated region body
PF: predicated region fallthrough
CT: control target
= control target key end

     0   :  { %10 = vsyncpa [#allocation3], 0  ;;  %s1103_s0 = inlined_call_operand.hbm [shape: bf16[40,128], index: 0, kind: input, shape index: {}]   ;;  %s1104_s1 = inlined_call_operand.hbm [shape: bf16[128,256], index: 1, kind: input, shape index: {}]   ;;  %s1105_s2 = inlined_call_operand.hbm [shape: bf16[128,128], index: 2, kind: input, shape index: {}]   ;;  %s1106_s3 = inlined_call_operand.hbm [shape: bf16[128,128], index: 3, kind: input, shape index: {}]   ;;  %s1107_s4 = inlined_call_operand.vmem [shape: f32[1,128], index: 4, kind: input, shape index: {}]   ;;  %s1108_s5 = inlined_call_operand.hbm [shape: f32[40,128], index: 5, kind: output, shape index: {}]  }
   0x1   :  { %11 = vsyncpa [#allocation6], 0 }
   0x2   :  { %12 = vsyncpa [#allocation9], 0 }
   0x3   :  { %13 = vsyncpa [#allocation4], 0  ;;  %s908_s18 = smov [#allocation5]   ;;  %s790_s22 = scalar_lea.hbm %s1104_s1, 2048 }
   0x4   :  { %s31_s19 = sshll.u32 %s908_s18, 4  ;;  %p791_p0 = scmp.ne.s32.totalorder %s1104_s1, %s790_s22  ;;  %s32_s19 = int_to_ptr.vmem [resolvable:$true] %s31_s19 }
   0x5   :  { %p794_p1 = scmp.lt.u32.totalorder %s790_s22, %s1104_s1 }
   0x7   :  { %p796_p2 = pnand %p794_p1, %p791_p0 }
   0x9   :  { %799 = shalt.err (!%p796_p2)
}
   0xa   :  { %s800_s27 = scalar_lea.vmem %s32_s19, 2048  ;;  %p805_p4 = scmp.lt.s32.totalorder %s32_s19, %s32_s19 }
   0xb   :  { %p801_p3 = scmp.ne.s32.totalorder %s32_s19, %s800_s27  ;;  %p806_p5 = scmp.lt.s32.totalorder %s800_s27, %s800_s27 }
   0xd   :  { %p807_p6 = por %p806_p5, %p805_p4 }
   0xf   :  { %p808_p7 = pnand %p807_p6, %p801_p3 }
  0x11   :  { %811 = shalt.err (!%p808_p7)
}
  0x12   :  { %s909_s28 = smov 128   ;;  %s910_s29 = smov 8  }
  0x13   :  { %37 = dma.hbm_to_vmem [thread:$0]  %s1104_s1, 2048, %s32_s19, [#allocation6], %s909_s28, %s909_s28, %s910_s29  }
  0x14   :  { %s911_s7 = smov [#allocation2]   ;;  %s812_s11 = scalar_lea.hbm %s1103_s0, 320 }
  0x15   :  { %s19_s8 = sshll.u32 %s911_s7, 4  ;;  %p813_p8 = scmp.ne.s32.totalorder %s1103_s0, %s812_s11  ;;  %s20_s8 = int_to_ptr.vmem [resolvable:$true] %s19_s8 }
  0x16   :  { %p816_p9 = scmp.lt.u32.totalorder %s812_s11, %s1103_s0 }
  0x18   :  { %p818_p10 = pnand %p816_p9, %p813_p8 }
  0x1a   :  { %821 = shalt.err (!%p818_p10)
}
  0x1b   :  { %s822_s16 = scalar_lea.vmem %s20_s8, 320  ;;  %p827_p12 = scmp.lt.s32.totalorder %s20_s8, %s20_s8 }
  0x1c   :  { %p823_p11 = scmp.ne.s32.totalorder %s20_s8, %s822_s16  ;;  %p828_p13 = scmp.lt.s32.totalorder %s822_s16, %s822_s16 }
  0x1e   :  { %p829_p0 = por %p828_p13, %p827_p12 }
  0x20   :  { %p830_p1 = pnand %p829_p0, %p823_p11 }
  0x22   :  { %833 = shalt.err (!%p830_p1)
}
  0x23   :  { %s912_s1 = smov 64   ;;  %s913_s17 = smov 4  }
  0x24   :  { %25 = dma.hbm_to_vmem [thread:$0]  %s1103_s0, 320, %s20_s8, [#allocation3], %s912_s1, %s912_s1, %s913_s17  }
  0x25   :  { %s914_s20 = smov [#allocation7]   ;;  %s915_s22 = smov [#allocation8]  }
  0x26   :  { %s43_s21 = sshll.u32 %s914_s20, 4  ;;  %s55_s23 = sshll.u32 %s915_s22, 4  ;;  %s44_s21 = int_to_ptr.vmem [resolvable:$true] %s43_s21  ;;  %s980_s23 = int_to_ptr.vmem [resolvable:$true] %s55_s23 }
  0x27   :  { %s834_s26 = scalar_lea.hbm %s1105_s2, 1024 }
  0x28   :  { %p835_p2 = scmp.ne.s32.totalorder %s1105_s2, %s834_s26  ;;  %p838_p3 = scmp.lt.u32.totalorder %s834_s26, %s1105_s2 }
  0x2a   :  { %p840_p4 = pnand %p838_p3, %p835_p2 }
  0x2c   :  { %843 = shalt.err (!%p840_p4)
}
  0x2d   :  { %s844_s0 = scalar_lea.vmem %s44_s21, 1024  ;;  %p849_p6 = scmp.lt.s32.totalorder %s44_s21, %s44_s21 }
  0x2e   :  { %p845_p5 = scmp.ne.s32.totalorder %s44_s21, %s844_s0  ;;  %p850_p7 = scmp.lt.s32.totalorder %s844_s0, %s844_s0 }
  0x30   :  { %p851_p8 = por %p850_p7, %p849_p6 }
  0x32   :  { %p852_p9 = pnand %p851_p8, %p845_p5 }
  0x34   :  { %855 = shalt.err (!%p852_p9)
}
  0x35   :  { %49 = dma.hbm_to_vmem [thread:$0]  %s1105_s2, 1024, %s44_s21, [#allocation6], %s912_s1, %s912_s1, %s913_s17  }
  0x36   :  { %s856_s12 = scalar_lea.hbm %s1106_s3, 1024 }
  0x37   :  { %p857_p10 = scmp.ne.s32.totalorder %s1106_s3, %s856_s12  ;;  %p860_p11 = scmp.lt.u32.totalorder %s856_s12, %s1106_s3 }
  0x39   :  { %p862_p12 = pnand %p860_p11, %p857_p10 }
  0x3b   :  { %865 = shalt.err (!%p862_p12)
}
  0x3c   :  { %s866_s18 = scalar_lea.vmem %s980_s23, 1024  ;;  %p871_p0 = scmp.lt.s32.totalorder %s980_s23, %s980_s23 }
  0x3d   :  { %p867_p13 = scmp.ne.s32.totalorder %s980_s23, %s866_s18  ;;  %p872_p1 = scmp.lt.s32.totalorder %s866_s18, %s866_s18 }
  0x3f   :  { %p873_p2 = por %p872_p1, %p871_p0 }
  0x41   :  { %p874_p3 = pnand %p873_p2, %p867_p13 }
  0x43   :  { %877 = shalt.err (!%p874_p3)
}
  0x44   :  { %61 = dma.hbm_to_vmem [thread:$0]  %s1106_s3, 1024, %s980_s23, [#allocation9], %s912_s1, %s912_s1, %s913_s17  }
  0x45   :  { %900 = dma.done.wait [#allocation3], 320  }
  0x46   :  { %901 = vsyncadd [#allocation3], 4294966976 }
  0x47   :  { %902 = dma.done.wait [#allocation6], 3072  }
  0x48   :  { %903 = vsyncadd [#allocation6], 4294964224 }
  0x49   :  { %904 = dma.done.wait [#allocation9], 1024  }
  0x4a   :  { %905 = vsyncadd [#allocation9], 4294966272  ;;  %v916_v0 = vmov 0   ;;  %v737_v1 = vld [vmem:[#allocation5 + $0x4] ss:$8 sps:$4 sm:$0xff]   ;;  %v762_v18 = vld [vmem:[#allocation2 + $0x8] sm:$0xff]  }
  0x4b   :  { %226 = vmatprep.mubr.bf16.mxu0 %v916_v0  ;;  %v739_v2 = vld [vmem:[#allocation5] ss:$8 sps:$4 sm:$0xff]   ;;  %194 = vmatprep.subr.bf16.mxu0 %v737_v1  ;;  %v740_v3 = vld [vmem:[#allocation5 + $0x14] ss:$8 sps:$4 sm:$0xff]   ;;  %v742_v4 = vld [vmem:[#allocation5 + $0x10] ss:$8 sps:$4 sm:$0xff]  }
  0x4c   :  { %195 = vmatpush1.bf16.msra.mxu0 %v739_v2  ;;  %v743_v5 = vld [vmem:[#allocation5 + $0x24] ss:$8 sps:$4 sm:$0xff]   ;;  %v745_v6 = vld [vmem:[#allocation5 + $0x20] ss:$8 sps:$4 sm:$0xff]   ;;  %v746_v7 = vld [vmem:[#allocation5 + $0x34] ss:$8 sps:$4 sm:$0xff]  }
  0x4d   :  { %196 = vmatprep.subr.bf16.mxu0 %v740_v3  ;;  %v748_v8 = vld [vmem:[#allocation5 + $0x30] ss:$8 sps:$4 sm:$0xff]   ;;  %v749_v9 = vld [vmem:[#allocation5 + $0x44] ss:$8 sps:$4 sm:$0xff]   ;;  %v751_v10 = vld [vmem:[#allocation5 + $0x40] ss:$8 sps:$4 sm:$0xff]  }
  0x4e   :  { %v752_v11 = vld [vmem:[#allocation5 + $0x54] ss:$8 sps:$4 sm:$0xff]   ;;  %v754_v12 = vld [vmem:[#allocation5 + $0x50] ss:$8 sps:$4 sm:$0xff]   ;;  %v755_v13 = vld [vmem:[#allocation5 + $0x64] ss:$8 sps:$4 sm:$0xff]  }
  0x4f   :  { %v757_v14 = vld [vmem:[#allocation5 + $0x60] ss:$8 sps:$4 sm:$0xff]   ;;  %v758_v15 = vld [vmem:[#allocation5 + $0x74] ss:$8 sps:$4 sm:$0xff]   ;;  %v760_v16 = vld [vmem:[#allocation5 + $0x70] ss:$8 sps:$4 sm:$0xff]  }
  0x50   :  { %197 = vmatpush1.bf16.msra.mxu0 %v742_v4  ;;  %v761_v17 = vld [vmem:[#allocation2] sm:$0xff]   ;;  %v763_v19 = vld [vmem:[#allocation2 + $0x10] ss:$0 sps:$4 sm:$0xff]   ;;  %v764_v20 = vld [vmem:[#allocation8] sm:$0xff]   ;;  %v917_v21 = vmov 0.0   ;;  %vm918_vm0 = vmmov 0  }
  0x51   :  { %198 = vmatprep.subr.bf16.mxu0 %v743_v5  ;;  %645 = vmatprep.subr.bf16.mxu1 %v917_v21  ;;  %v1019_v22 = vld [vmem:[#allocation7] sm:$0xff]   ;;  %v766_v23 = vld [vmem:[#allocation8 + $0x8] sm:$0xff]   ;;  %v768_v25 = vld [vmem:[#allocation8 + $0x10] sm:$0xff]  }
  0x52   :  { %646 = vmatpush3.bf16.msra.mxu1 %v764_v20  ;;  %v1024_v24 = vld [vmem:[#allocation7 + $0x8] sm:$0xff]   ;;  %v1029_v26 = vld [vmem:[#allocation7 + $0x10] sm:$0xff]   ;;  %v770_v27 = vld [vmem:[#allocation8 + $0x18] sm:$0xff]   ;;  %661 = vmatprep.mubr.msk.bf16.mxu1 %vm918_vm0, %v917_v21 }
  0x53   :  { %647 = vmatprep.subr.bf16.mxu1 %v917_v21  ;;  %v1034_v28 = vld [vmem:[#allocation7 + $0x18] sm:$0xff]   ;;  %v772_v29 = vld [vmem:[#allocation8 + $0x20] sm:$0xff]   ;;  %v774_v31 = vld [vmem:[#allocation8 + $0x28] sm:$0xff]  }
  0x54   :  { %199 = vmatpush1.bf16.msra.mxu0 %v745_v6  ;;  %v1039_v30 = vld [vmem:[#allocation7 + $0x20] sm:$0xff]   ;;  %v1044_v32 = vld [vmem:[#allocation7 + $0x28] sm:$0xff]   ;;  %v776_v33 = vld [vmem:[#allocation8 + $0x30] sm:$0xff]  }
  0x55   :  { %200 = vmatprep.subr.bf16.mxu0 %v746_v7  ;;  %v1049_v34 = vld [vmem:[#allocation7 + $0x30] sm:$0xff]   ;;  %v778_v35 = vld [vmem:[#allocation8 + $0x38] sm:$0xff]   ;;  %v606_v1 = vld [vmem:[%s1107_s4] ss:$0 sm:$0xff]  ;;  %s919_s4 = smov [#allocation10]  }
  0x56   :  { %648 = vmatpush3.bf16.msra.mxu1 %v766_v23  ;;  %v1054_v36 = vld [vmem:[#allocation7 + $0x38] sm:$0xff]   ;;  %s573_s17 = sshll.u32 %s919_s4, 4  ;;  %s574_s17 = int_to_ptr.vmem [resolvable:$true] %s573_s17 }
  0x57   :  { %649 = vmatprep.subr.bf16.mxu1 %v917_v21  ;;  %s878_s20 = scalar_lea.vmem %s574_s17, 640  ;;  %p883_p5 = scmp.lt.s32.totalorder %s574_s17, %s574_s17 }
  0x58   :  { %201 = vmatpush1.bf16.msra.mxu0 %v748_v8  ;;  %p879_p4 = scmp.ne.s32.totalorder %s574_s17, %s878_s20  ;;  %p884_p6 = scmp.lt.s32.totalorder %s878_s20, %s878_s20 }
  0x59   :  { %202 = vmatprep.subr.bf16.mxu0 %v749_v9 }
  0x5a   :  { %650 = vmatpush3.bf16.msra.mxu1 %v768_v25  ;;  %p885_p7 = por %p884_p6, %p883_p5 }
  0x5b   :  { %651 = vmatprep.subr.bf16.mxu1 %v917_v21 }
  0x5c   :  { %203 = vmatpush1.bf16.msra.mxu0 %v751_v10  ;;  %p886_p8 = pnand %p885_p7, %p879_p4 }
  0x5d   :  { %204 = vmatprep.subr.bf16.mxu0 %v752_v11 }
  0x5e   :  { %652 = vmatpush3.bf16.msra.mxu1 %v770_v27 }
  0x5f   :  { %653 = vmatprep.subr.bf16.mxu1 %v917_v21 }
  0x60   :  { %205 = vmatpush1.bf16.msra.mxu0 %v754_v12 }
  0x61   :  { %206 = vmatprep.subr.bf16.mxu0 %v755_v13 }
  0x62   :  { %654 = vmatpush3.bf16.msra.mxu1 %v772_v29 }
  0x63   :  { %655 = vmatprep.subr.bf16.mxu1 %v917_v21 }
  0x64   :  { %207 = vmatpush1.bf16.msra.mxu0 %v757_v14 }
  0x65   :  { %208 = vmatprep.subr.bf16.mxu0 %v758_v15 }
  0x66   :  { %656 = vmatpush3.bf16.msra.mxu1 %v774_v31 }
  0x67   :  { %657 = vmatprep.subr.bf16.mxu1 %v917_v21 }
  0x68   :  { %209 = vmatpush1.bf16.msra.mxu0 %v760_v16 }
  0x69   :  { %673 = vmatprep.subr.bf16.mxu0 %v917_v21 }
  0x6a   :  { %658 = vmatpush3.bf16.msra.mxu1 %v776_v33 }
  0x6b   :  { %227 = vmatmul.mubr.bf16.vlgmr.msra.gmra.mrb[0].mxu0 %v761_v17  ;;  %659 = vmatprep.subr.bf16.mxu1 %v917_v21 }
  0x6c   :  { %236 = vmatprep.mubr.bf16.mxu0 %v916_v0  ;;  %674 = vmatpush3.bf16.msra.mxu0 %v1019_v22 }
  0x6d   :  { %675 = vmatprep.subr.bf16.mxu0 %v917_v21 }
  0x6e   :  { %660 = vmatpush3.bf16.msra.mxu1 %v778_v35 }
  0x6f   :  { %701 = vmatprep.subr.bf16.mxu1 %v917_v21 }
  0x70   :  { %676 = vmatpush3.bf16.msra.mxu0 %v1024_v24 }
  0x71   :  { %677 = vmatprep.subr.bf16.mxu0 %v917_v21 }
  0x73   :  { %237 = vmatmul.mubr.bf16.gmra.mrb[4].mxu0 %v762_v18 }
  0x74   :  { %246 = vmatprep.mubr.bf16.mxu0 %v916_v0  ;;  %678 = vmatpush3.bf16.msra.mxu0 %v1029_v26 }
  0x75   :  { %679 = vmatprep.subr.bf16.mxu0 %v917_v21 }
  0x78   :  { %680 = vmatpush3.bf16.msra.mxu0 %v1034_v28 }
  0x79   :  { %681 = vmatprep.subr.bf16.mxu0 %v917_v21 }
  0x7b   :  { %247 = vmatmul.mubr.bf16.gmra.mrb[8].mxu0 %v763_v19 }
  0x7c   :  { %682 = vmatpush3.bf16.msra.mxu0 %v1039_v30  ;;  %689 = vmatprep.mubr.msk.bf16.mxu0 %vm918_vm0, %v917_v21 }
  0x7d   :  { %683 = vmatprep.subr.bf16.mxu0 %v917_v21 }
  0x80   :  { %684 = vmatpush3.bf16.msra.mxu0 %v1044_v32 }
  0x81   :  { %685 = vmatprep.subr.bf16.mxu0 %v917_v21 }
  0x84   :  { %686 = vmatpush3.bf16.msra.mxu0 %v1049_v34 }
  0x85   :  { %687 = vmatprep.subr.bf16.mxu0 %v917_v21 }
  0x88   :  { %688 = vmatpush3.bf16.msra.mxu0 %v1054_v36 }
 0x13e   :  { %v228_v37 = vpop.f32.mrb[0].mxu0 }
 0x13f   :  { %v255_v38 = vmul.f32 %v228_v37, %v228_v37  ;;  %v230_v39 = vpop.f32.mrb[1].mxu0 }
 0x140   :  { %v260_v40 = vmul.f32 %v230_v39, %v230_v39  ;;  %v232_v41 = vpop.f32.mrb[2].mxu0 }
 0x141   :  { %v256_v42 = vmul.f32 %v232_v41, %v232_v41  ;;  %v234_v43 = vpop.f32.mrb[3].mxu0 }
 0x142   :  { %v265_v44 = vadd.f32 %v260_v40, %v255_v38  ;;  %v261_v45 = vmul.f32 %v234_v43, %v234_v43 }
 0x144   :  { %v270_v46 = vadd.f32 1e-30, %v265_v44  ;;  %v266_v47 = vadd.f32 %v261_v45, %v256_v42 }
 0x146   :  { %780 = vrsqrt.f32 %v270_v46  ;;  %v271_v48 = vadd.f32 1e-30, %v266_v47  ;;  %v238_v49 = vpop.f32.mrb[4].mxu0 }
 0x147   :  { %v257_v50 = vmul.f32 %v238_v49, %v238_v49  ;;  %v240_v51 = vpop.f32.mrb[5].mxu0 }
 0x148   :  { %782 = vrsqrt.f32 %v271_v48  ;;  %v262_v52 = vmul.f32 %v240_v51, %v240_v51  ;;  %v242_v53 = vpop.f32.mrb[6].mxu0 }
 0x149   :  { %v258_v54 = vmul.f32 %v242_v53, %v242_v53  ;;  %v244_v55 = vpop.f32.mrb[7].mxu0 }
 0x14a   :  { %v267_v56 = vadd.f32 %v262_v52, %v257_v50  ;;  %v263_v57 = vmul.f32 %v244_v55, %v244_v55 }
 0x14c   :  { %v272_v58 = vadd.f32 1e-30, %v267_v56  ;;  %v268_v59 = vadd.f32 %v263_v57, %v258_v54 }
 0x14e   :  { %784 = vrsqrt.f32 %v272_v58  ;;  %v273_v60 = vadd.f32 1e-30, %v268_v59  ;;  %v248_v61 = vpop.f32.mrb[8].mxu0 }
 0x14f   :  { %v259_v62 = vmul.f32 %v248_v61, %v248_v61  ;;  %v250_v63 = vpop.f32.mrb[9].mxu0 }
 0x150   :  { %v781_v0 = vpop.eup %780  ;;  %786 = vrsqrt.f32 %v273_v60  ;;  %v264_v2 = vmul.f32 %v250_v63, %v250_v63  ;;  %v252_v3 = vpop.f32.mrb[10].mxu0 }
 0x151   :  { %v280_v4 = vmul.f32 %v781_v0, %v265_v44  ;;  %v253_v5 = vpop.f32.mrb[11].mxu0 }
 0x152   :  { %v783_v6 = vpop.eup %782  ;;  %v269_v7 = vadd.f32 %v264_v2, %v259_v62 }
 0x153   :  { %v292_v8 = vsub.f32 %v280_v4, %v606_v1  ;;  %v281_v9 = vmul.f32 %v783_v6, %v266_v47 }
 0x154   :  { %v274_v10 = vadd.f32 1e-30, %v269_v7 }
 0x155   :  { %v297_v11 = vmax.f32 %v292_v8, 0.0  ;;  %v293_v12 = vsub.f32 %v281_v9, %v606_v1 }
 0x156   :  { %788 = vrsqrt.f32 %v274_v10 }
 0x157   :  { %v302_v13 = vmul.f32 %v781_v0, %v297_v11  ;;  %v298_v14 = vmax.f32 %v293_v12, 0.0 }
 0x158   :  { %v785_v15 = vpop.eup %784 }
 0x159   :  { %v307_v16 = vmul.f32 %v302_v13, %v228_v37  ;;  %v315_v17 = vmul.f32 %v302_v13, %v230_v39  ;;  %v303_v18 = vmul.f32 %v783_v6, %v298_v14  ;;  %v282_v19 = vmul.f32 %v785_v15, %v267_v56 }
 0x15a   :  { %v787_v20 = vpop.eup %786 }
 0x15b   :  { %v308_v23 = vmul.f32 %v303_v18, %v232_v41  ;;  %v316_v25 = vmul.f32 %v303_v18, %v234_v43  ;;  %v294_v27 = vsub.f32 %v282_v19, %v606_v1  ;;  %v283_v29 = vmul.f32 %v787_v20, %v268_v59 }
 0x15d   :  { %v312_v31 = vpack.c.bf16 %v308_v23, %v307_v16  ;;  %v320_v33 = vpack.c.bf16 %v316_v25, %v315_v17  ;;  %v299_v35 = vmax.f32 %v294_v27, 0.0  ;;  %v295_v38 = vsub.f32 %v283_v29, %v606_v1 }
 0x15f   :  { %v304_v40 = vmul.f32 %v785_v15, %v299_v35  ;;  %v300_v42 = vmax.f32 %v295_v38, 0.0  ;;  %662 = vmatmul.mubr.bf16.vlgmr.msra.gmra.mrb[0].mxu1 %v320_v33  ;;  %690 = vmatmul.mubr.bf16.vlgmr.msra.gmra.mrb[12].mxu0 %v312_v31 }
 0x160   :  { %v789_v44 = vpop.eup %788  ;;  %709 = vmatpush3.bf16.msra.mxu1 %v1019_v22  ;;  %665 = vmatprep.mubr.msk.bf16.mxu1 %vm918_vm0, %v917_v21 }
 0x161   :  { %v309_v37 = vmul.f32 %v304_v40, %v238_v49  ;;  %v317_v39 = vmul.f32 %v304_v40, %v240_v51  ;;  %v305_v41 = vmul.f32 %v787_v20, %v300_v42  ;;  %v284_v43 = vmul.f32 %v789_v44, %v269_v7  ;;  %702 = vmatprep.subr.bf16.mxu1 %v917_v21 }
 0x162   :  { %693 = vmatprep.mubr.msk.bf16.mxu0 %vm918_vm0, %v917_v21 }
 0x163   :  { %v310_v45 = vmul.f32 %v305_v41, %v242_v53  ;;  %v318_v46 = vmul.f32 %v305_v41, %v244_v55  ;;  %v296_v47 = vsub.f32 %v284_v43, %v606_v1 }
 0x164   :  { %710 = vmatpush3.bf16.msra.mxu1 %v1024_v24 }
 0x165   :  { %v321_v48 = vpack.c.bf16 %v318_v46, %v317_v39  ;;  %v301_v50 = vmax.f32 %v296_v47, 0.0  ;;  %703 = vmatprep.subr.bf16.mxu1 %v917_v21  ;;  %v313_v22 = vpack.c.bf16 %v310_v45, %v309_v37 }
 0x167   :  { %v306_v52 = vmul.f32 %v789_v44, %v301_v50  ;;  %666 = vmatmul.mubr.bf16.gmra.mrb[4].mxu1 %v321_v48  ;;  %694 = vmatmul.mubr.bf16.gmra.mrb[16].mxu0 %v313_v22 }
 0x168   :  { %711 = vmatpush3.bf16.msra.mxu1 %v1029_v26  ;;  %669 = vmatprep.mubr.msk.bf16.mxu1 %vm918_vm0, %v917_v21 }
 0x169   :  { %v311_v49 = vmul.f32 %v306_v52, %v248_v61  ;;  %v319_v51 = vmul.f32 %v306_v52, %v250_v63  ;;  %704 = vmatprep.subr.bf16.mxu1 %v917_v21 }
 0x16b   :  { %v322_v24 = vpack.c.bf16 %v319_v51, %v319_v51  ;;  %v314_v26 = vpack.c.bf16 %v311_v49, %v311_v49 }
 0x16c   :  { %712 = vmatpush3.bf16.msra.mxu1 %v1034_v28 }
 0x16d   :  { %705 = vmatprep.subr.bf16.mxu1 %v917_v21 }
 0x16f   :  { %670 = vmatmul.mubr.bf16.gmra.mrb[8].mxu1 %v322_v24 }
 0x170   :  { %713 = vmatpush3.bf16.msra.mxu1 %v1039_v30  ;;  %697 = vmatprep.mubr.msk.bf16.mxu1 %vm918_vm0, %v917_v21 }
 0x171   :  { %706 = vmatprep.subr.bf16.mxu1 %v917_v21 }
 0x174   :  { %714 = vmatpush3.bf16.msra.mxu1 %v1044_v32 }
 0x175   :  { %707 = vmatprep.subr.bf16.mxu1 %v917_v21 }
 0x178   :  { %715 = vmatpush3.bf16.msra.mxu1 %v1049_v34 }
 0x179   :  { %708 = vmatprep.subr.bf16.mxu1 %v917_v21 }
 0x17c   :  { %716 = vmatpush3.bf16.msra.mxu1 %v1054_v36 }
 0x17f   :  { %698 = vmatmul.mubr.bf16.vlgmr.msra.gmra.mrb[8].mxu1 %v314_v26 }
 0x232   :  { %v437_v28 = vpop.f32.mrb[0].mxu1  ;;  %v541_v53 = vpop.f32.mrb[12].mxu0 }
 0x233   :  { %v542_v30 = vadd.f32 %v541_v53, %v437_v28  ;;  %v663_v54 = vpop.f32.mrb[1].mxu1  ;;  %v691_v55 = vpop.f32.mrb[13].mxu0 }
 0x234   :  { %v440_v56 = vpop.f32.mrb[2].mxu1  ;;  %v544_v57 = vpop.f32.mrb[14].mxu0 }
 0x235   :  { %563 = vst [vmem:[#allocation10] sm:$0xff] %v542_v30  ;;  %v545_v58 = vadd.f32 %v544_v57, %v440_v56  ;;  %v664_v32 = vpop.f32.mrb[3].mxu1  ;;  %v692_v59 = vpop.f32.mrb[15].mxu0 }
 0x237   :  { %564 = vst [vmem:[#allocation10 + $0x8] sm:$0xff] %v545_v58 }
 0x23a   :  { %v445_v60 = vpop.f32.mrb[4].mxu1  ;;  %v549_v34 = vpop.f32.mrb[16].mxu0 }
 0x23b   :  { %v550_v61 = vadd.f32 %v549_v34, %v445_v60  ;;  %v667_v21 = vpop.f32.mrb[5].mxu1  ;;  %v695_v62 = vpop.f32.mrb[17].mxu0 }
 0x23c   :  { %v448_v36 = vpop.f32.mrb[6].mxu1  ;;  %v552_v63 = vpop.f32.mrb[18].mxu0 }
 0x23d   :  { %565 = vst [vmem:[#allocation10 + $0x10] sm:$0xff] %v550_v61  ;;  %v553_v0 = vadd.f32 %v552_v63, %v448_v36  ;;  %v668_v1 = vpop.f32.mrb[7].mxu1  ;;  %v696_v2 = vpop.f32.mrb[19].mxu0 }
 0x23f   :  { %566 = vst [vmem:[#allocation10 + $0x18] sm:$0xff] %v553_v0 }
 0x252   :  { %v557_v3 = vpop.f32.mrb[8].mxu1 }
 0x253   :  { %567 = vst [vmem:[#allocation10 + $0x20] sm:$0xff] %v557_v3  ;;  %v699_v4 = vpop.f32.mrb[9].mxu1 }
 0x254   :  { %v560_v5 = vpop.f32.mrb[10].mxu1 }
 0x255   :  { %889 = shalt.err (!%p886_p8)
}
 0x256   :  { %s890_s23 = scalar_lea.hbm %s1108_s5, 640 }
 0x257   :  { %p891_p9 = scmp.ne.s32.totalorder %s1108_s5, %s890_s23  ;;  %p894_p10 = scmp.lt.u32.totalorder %s890_s23, %s1108_s5 }
 0x259   :  { %p896_p11 = pnand %p894_p10, %p891_p9 }
 0x25b   :  { %899 = shalt.err (!%p896_p11)
}
 0x25c   :  { %579 = dma.vmem_to_hbm [thread:$0]  %s574_s17, 640, %s1108_s5, [#allocation4], %s909_s28, %s909_s28, %s910_s29   ;;  %v700_v6 = vpop.f32.mrb[11].mxu1 }
 0x25d   :  { %906 = dma.done.wait [#allocation4], 640  }
 0x25e   :  { %907 = vsyncadd [#allocation4], 4294966656 }
 0x25f   :  { %583 = vsyncpa [#allocation3], 1 }
 0x260   :  { %584 = vsyncpa [#allocation6], 1 }
 0x261   :  { %585 = vsyncpa [#allocation9], 1 }
 0x262   :  { %586 = vsyncpa [#allocation4], 1 }

</bundles_post_ra>
